<compile_context>
chip_gen: v7x
topology: tpu7x:2x2x1
jax: 0.10.0
libtpu: 0.0.40
codegen_flags: <defaults>
</compile_context>

<pallas_src>
import functools

import jax
import jax.numpy as jnp
from jax.experimental import pallas as pl
from jax.experimental.pallas import tpu as pltpu

LANE = 128
ACC_ROWS = 32                      # accumulator height; also max sublane packing (int8)
ALIGN_ELEMS = LANE * ACC_ROWS      # 4096: lane + sublane-packing + accumulator alignment
PER_BUFFER_BYTES = 4 << 20         # ~4 MiB per input per pipeline buffer


def _default_num_cores() -> int:
    """2 on multi-TensorCore chips (v4 / v5p / v7x), 1 on single-TC chips (v5e / v6e)."""
    try:
        kind = jax.devices()[0].device_kind.lower()
    except Exception:
        return 1
    single_tc_tags = ("v2", "v3", "v5e", "v5 lite", "v5lite", "v6")
    if any(tag in kind for tag in single_tc_tags):
        return 1
    return 2


def _rmse_sum_sq_kernel(yhat_ref, y_ref, out_ref, acc_ref, *,
                        n_rows, tile_rows, tiles_per_core, needs_mask):
    c = pl.program_id(0)          # TensorCore / parallel axis
    i = pl.program_id(1)          # streaming (reduction) axis

    @pl.when(i == 0)
    def _():
        acc_ref[...] = jnp.zeros_like(acc_ref)

    d = yhat_ref[...].astype(jnp.float32) - y_ref[...].astype(jnp.float32)
    sq = d * d

    def fold(x):
        # Pure VPU adds into a (32, 128) accumulator; reshape is a free
        # reinterpretation of the sublane tiling (tile_rows % 32 == 0).
        return jnp.sum(x.reshape(tile_rows // ACC_ROWS, ACC_ROWS, LANE), axis=0)

    if needs_mask:
        row0 = (c * tiles_per_core + i) * tile_rows

        @pl.when(row0 + tile_rows <= n_rows)
        def _():                      # hot path: fully in-range tile, no mask ops
            acc_ref[...] += fold(sq)

        @pl.when(row0 + tile_rows > n_rows)
        def _():                      # boundary tile or clamped out-of-range tile
            grow = row0 + jax.lax.broadcasted_iota(jnp.int32, (tile_rows, LANE), 0)
            acc_ref[...] += fold(jnp.where(grow < n_rows, sq, 0.0))
    else:
        acc_ref[...] += fold(sq)

    @pl.when(i == pl.num_programs(1) - 1)
    def _():
        out_ref[0, 0] = jnp.sum(acc_ref[...])


def rmse_loss(yhat, y, *, tile_rows=None, num_cores=None):
    """RMSE(yhat, y) = sqrt(mean((yhat - y)**2)) via a Pallas streaming reduce."""
    assert yhat.shape == y.shape, "yhat and y must have the same shape"
    n = yhat.size
    assert n > 0, "inputs must be non-empty"

    flat_yhat = yhat.reshape(-1)
    flat_y = y.reshape(-1)

    # Zero-pad to a multiple of 4096 elements (< 16 KiB of zeros, only when the
    # flat size is not already aligned).  Zero diffs contribute nothing to the
    # sum; it keeps rows a multiple of 32 so every dtype's sublane packing and
    # the 32-row accumulator fold line up with no small-array edge cases.
    rem = n % ALIGN_ELEMS
    if rem:
        pad = ALIGN_ELEMS - rem
        flat_yhat = jnp.pad(flat_yhat, (0, pad))
        flat_y = jnp.pad(flat_y, (0, pad))

    rows = flat_yhat.size // LANE          # multiple of ACC_ROWS
    yhat2d = flat_yhat.reshape(rows, LANE)
    y2d = flat_y.reshape(rows, LANE)

    # Dtype-aware tile: ~PER_BUFFER_BYTES per input per pipeline buffer.
    itemsize_a = jnp.dtype(yhat2d.dtype).itemsize
    itemsize_b = jnp.dtype(y2d.dtype).itemsize
    if tile_rows is None:
        tile_rows = PER_BUFFER_BYTES // (LANE * max(itemsize_a, itemsize_b))
    tr = min(int(tile_rows), rows)
    tr = max(ACC_ROWS, (tr // ACC_ROWS) * ACC_ROWS)

    total_tiles = pl.cdiv(rows, tr)
    if num_cores is None:
        num_cores = _default_num_cores()
    nc = max(1, min(int(num_cores), total_tiles))
    tiles_per_core = pl.cdiv(total_tiles, nc)
    coverage_rows = nc * tiles_per_core * tr
    needs_mask = coverage_rows != rows
    last_tile = total_tiles - 1

    def in_map(c, i):
        # Clamp so a fully out-of-range tile (uneven split across cores) re-reads
        # a valid tile; its rows are zeroed by the gated mask branch in-kernel.
        return (jnp.minimum(c * tiles_per_core + i, last_tile), 0)

    # Explicit VMEM limit so the larger tiles also compile on v5e's 16 MiB
    # scoped default; stays <= 32 MiB so it is safe on v7x (64 MiB physical).
    resident = 2 * tr * LANE * (itemsize_a + itemsize_b)
    vmem_limit = int(max(16 << 20, min(32 << 20, resident + (8 << 20))))

    partials = pl.pallas_call(
        functools.partial(
            _rmse_sum_sq_kernel,
            n_rows=rows,
            tile_rows=tr,
            tiles_per_core=tiles_per_core,
            needs_mask=needs_mask,
        ),
        out_shape=jax.ShapeDtypeStruct((nc, 1), jnp.float32),
        grid_spec=pltpu.PrefetchScalarGridSpec(
            num_scalar_prefetch=0,
            grid=(nc, tiles_per_core),
            in_specs=[
                pl.BlockSpec((tr, LANE), in_map),
                pl.BlockSpec((tr, LANE), in_map),
            ],
            out_specs=pl.BlockSpec((1, 1), lambda c, i: (c, 0),
                                   memory_space=pltpu.MemorySpace.SMEM),
            scratch_shapes=[pltpu.VMEM((ACC_ROWS, LANE), jnp.float32)],
        ),
        compiler_params=pltpu.CompilerParams(
            dimension_semantics=("parallel", "arbitrary"),
            vmem_limit_bytes=vmem_limit,
        ),
    )(yhat2d, y2d)

    # Final cross-core sum, mean over the TRUE element count, and sqrt.
    return jnp.sqrt(jnp.sum(partials) / n)


if __name__ == "__main__":
    key = jax.random.PRNGKey(0)
    k1, k2, k3, k4 = jax.random.split(key, 4)

    # NCHW-like predictions / targets (batch=2, channels=4, 16x16 spatial).
    shape = (2, 4, 16, 16)
    yhat = jax.random.normal(k1, shape, dtype=jnp.float32)
    y = jax.random.normal(k2, shape, dtype=jnp.float32)
    loss = jax.block_until_ready(rmse_loss(yhat, y))
    ref = jnp.sqrt(jnp.mean((yhat - y) ** 2))
    assert jnp.allclose(loss, ref, rtol=1e-5, atol=1e-6), (loss, ref)

    # Non lane-aligned size exercises the small zero-pad path.
    yh2 = jax.random.normal(k3, (3, 5, 7), dtype=jnp.float32)
    y2 = jax.random.normal(k4, (3, 5, 7), dtype=jnp.float32)
    loss2 = jax.block_until_ready(rmse_loss(yh2, y2))
    ref2 = jnp.sqrt(jnp.mean((yh2 - y2) ** 2))
    assert jnp.allclose(loss2, ref2, rtol=1e-5, atol=1e-6), (loss2, ref2)

    # bf16 inputs stream in their narrow dtype and are cast to f32 per tile in VMEM.
    yh3 = jax.random.normal(k1, (8, 256), dtype=jnp.bfloat16)
    y3 = jax.random.normal(k2, (8, 256), dtype=jnp.bfloat16)
    loss3 = jax.block_until_ready(rmse_loss(yh3, y3))
    ref3 = jnp.sqrt(jnp.mean(
        (yh3.astype(jnp.float32) - y3.astype(jnp.float32)) ** 2))
    assert jnp.allclose(loss3, ref3, rtol=1e-5, atol=1e-5), (loss3, ref3)

    # Multi-tile + forced 2-way core split with an uneven tile count exercises
    # the gated boundary-mask branch and the clamped out-of-range tile path.
    yh4 = jax.random.normal(k3, (72, 128), dtype=jnp.float32)
    y4 = jax.random.normal(k4, (72, 128), dtype=jnp.float32)
    loss4 = jax.block_until_ready(rmse_loss(yh4, y4, tile_rows=32, num_cores=2))
    ref4 = jnp.sqrt(jnp.mean((yh4 - y4) ** 2))
    assert jnp.allclose(loss4, ref4, rtol=1e-5, atol=1e-6), (loss4, ref4)

    print("KERNEL_OK")
</pallas_src>

<mosaic_0001>
module attributes {stable_mosaic.version = 11 : i64} {
  func.func @_rmse_sum_sq_kernel(%arg0: i32, %arg1: i32, %arg2: memref<32x128xf32, #tpu.memory_space<vmem>>, %arg3: memref<32x128xf32, #tpu.memory_space<vmem>>, %arg4: memref<1x1xf32, #tpu.memory_space<smem>>, %arg5: memref<32x128xf32, #tpu.memory_space<vmem>>) attributes {dimension_semantics = [#tpu.dimension_semantics<parallel>, #tpu.dimension_semantics<arbitrary>], iteration_bounds = array<i64: 1, 1>, scalar_prefetch = 0 : i64, scratch_operands = 1 : i64, tpu.core_type = #tpu.core_type<tc>, window_params = [{transform_indices = @transform_0, window_bounds = array<i64: 32, 128>}, {transform_indices = @transform_1, window_bounds = array<i64: 32, 128>}, {transform_indices = @transform_2, window_bounds = array<i64: 1, 1>}]} {
    %c0_i32 = arith.constant 0 : i32
    %0 = arith.cmpi eq, %arg1, %c0_i32 : i32
    %1 = arith.extui %0 : i1 to i32
    %c0_i32_0 = arith.constant 0 : i32
    %2 = arith.cmpi ne, %1, %c0_i32_0 : i32
    scf.if %2 {
      %cst_10 = arith.constant 0.000000e+00 : f32
      %15 = vector.broadcast %cst_10 : f32 to vector<32x128xf32>
      %c0_11 = arith.constant 0 : index
      %c0_12 = arith.constant 0 : index
      %16 = vector.load %arg5[%c0_11, %c0_12] : memref<32x128xf32, #tpu.memory_space<vmem>>, vector<32x128xf32>
      tpu.vector_store %arg5[%c0_11, %c0_12], %15 {strides = array<i32>} : memref<32x128xf32, #tpu.memory_space<vmem>>, vector<32x128xf32>,
    } else {
    }
    %c0 = arith.constant 0 : index
    %c0_1 = arith.constant 0 : index
    %3 = vector.load %arg2[%c0, %c0_1] : memref<32x128xf32, #tpu.memory_space<vmem>>, vector<32x128xf32>
    %c0_2 = arith.constant 0 : index
    %c0_3 = arith.constant 0 : index
    %4 = vector.load %arg3[%c0_2, %c0_3] : memref<32x128xf32, #tpu.memory_space<vmem>>, vector<32x128xf32>
    %5 = arith.subf %3, %4 : vector<32x128xf32>
    %6 = arith.mulf %5, %5 : vector<32x128xf32>
    %c0_4 = arith.constant 0 : index
    %c0_5 = arith.constant 0 : index
    %7 = vector.load %arg5[%c0_4, %c0_5] : memref<32x128xf32, #tpu.memory_space<vmem>>, vector<32x128xf32>
    %8 = vector.shape_cast %6 : vector<32x128xf32> to vector<1x32x128xf32>
    %cst = arith.constant dense<0.000000e+00> : vector<32x128xf32>
    %9 = vector.multi_reduction <add>, %8, %cst [0] : vector<1x32x128xf32> to vector<32x128xf32>
    %10 = arith.addf %7, %9 : vector<32x128xf32>
    %c0_6 = arith.constant 0 : index
    %c0_7 = arith.constant 0 : index
    %11 = vector.load %arg5[%c0_6, %c0_7] : memref<32x128xf32, #tpu.memory_space<vmem>>, vector<32x128xf32>
    tpu.vector_store %arg5[%c0_6, %c0_7], %10 {strides = array<i32>} : memref<32x128xf32, #tpu.memory_space<vmem>>, vector<32x128xf32>,
    %c0_i32_8 = arith.constant 0 : i32
    %12 = arith.cmpi eq, %arg1, %c0_i32_8 : i32
    %13 = arith.extui %12 : i1 to i32
    %c0_i32_9 = arith.constant 0 : i32
    %14 = arith.cmpi ne, %13, %c0_i32_9 : i32
    scf.if %14 {
      %c0_10 = arith.constant 0 : index
      %c0_11 = arith.constant 0 : index
      %15 = vector.load %arg5[%c0_10, %c0_11] : memref<32x128xf32, #tpu.memory_space<vmem>>, vector<32x128xf32>
      %16 = vector.shape_cast %15 : vector<32x128xf32> to vector<1x32x128xf32>
      %cst_12 = arith.constant dense<0.000000e+00> : vector<1xf32>
      %17 = vector.multi_reduction <add>, %16, %cst_12 [1, 2] : vector<1x32x128xf32> to vector<1xf32>
      %18 = vector.shape_cast %17 : vector<1xf32> to vector<1x1x1xf32>
      %19 = vector.extract %18[0, 0, 0] : f32 from vector<1x1x1xf32>
      %c0_13 = arith.constant 0 : index
      %c0_14 = arith.constant 0 : index
      %20 = memref.load %arg4[%c0_13, %c0_14] : memref<1x1xf32, #tpu.memory_space<smem>>
      memref.store %19, %arg4[%c0_13, %c0_14] : memref<1x1xf32, #tpu.memory_space<smem>>
    } else {
    }
    return
  }
  func.func @transform_0(%arg0: i32, %arg1: i32) -> (i32, i32) {
    %c1_i32 = arith.constant 1 : i32
    %0 = arith.muli %arg0, %c1_i32 : i32
    %1 = arith.addi %0, %arg1 : i32
    %c0_i32 = arith.constant 0 : i32
    %2 = arith.minsi %1, %c0_i32 : i32
    %c0_i32_0 = arith.constant 0 : i32
    %c0_i32_1 = arith.constant 0 : i32
    return %2, %c0_i32_0 : i32, i32
  }
  func.func @transform_1(%arg0: i32, %arg1: i32) -> (i32, i32) {
    %c1_i32 = arith.constant 1 : i32
    %0 = arith.muli %arg0, %c1_i32 : i32
    %1 = arith.addi %0, %arg1 : i32
    %c0_i32 = arith.constant 0 : i32
    %2 = arith.minsi %1, %c0_i32 : i32
    %c0_i32_0 = arith.constant 0 : i32
    %c0_i32_1 = arith.constant 0 : i32
    return %2, %c0_i32_0 : i32, i32
  }
  func.func @transform_2(%arg0: i32, %arg1: i32) -> (i32, i32) {
    %c0_i32 = arith.constant 0 : i32
    %c0_i32_0 = arith.constant 0 : i32
    return %arg0, %c0_i32 : i32, i32
  }
}

</mosaic_0001>

<bundles_post_ra>
// kernel: tpu_custom_call.1
= control target key start
LH: loop header
LB: loop body
LE: loop exit
PB: predicated region body
PF: predicated region fallthrough
CT: control target
= control target key end

     0   :  { %7 = vsyncpa [#allocation4], 0  ;;  %s263_s0 = inlined_call_operand.hbm [shape: f32[32,128], index: 0, kind: input, shape index: {}]   ;;  %s264_s1 = inlined_call_operand.hbm [shape: f32[32,128], index: 1, kind: input, shape index: {}]   ;;  %s265_s2 = inlined_call_operand.hbm [shape: f32[1,1], index: 2, kind: output, shape index: {}]  }
   0x1   :  { %8 = vsyncpa [#allocation7], 0 }
   0x2   :  { %9 = vsyncpa [#allocation5], 0  ;;  %s207_s9 = smov [#allocation3]   ;;  %s147_s13 = scalar_lea.hbm %s263_s0, 512 }
   0x3   :  { %s21_s10 = sshll.u32 %s207_s9, 4  ;;  %p148_p0 = scmp.ne.s32.totalorder %s263_s0, %s147_s13  ;;  %s22_s10 = int_to_ptr.vmem [resolvable:$true] %s21_s10 }
   0x4   :  { %p151_p1 = scmp.lt.u32.totalorder %s147_s13, %s263_s0 }
   0x6   :  { %p153_p2 = pnand %p151_p1, %p148_p0 }
   0x8   :  { %156 = shalt.err (!%p153_p2)
}
   0x9   :  { %s157_s18 = scalar_lea.vmem %s22_s10, 512  ;;  %p162_p4 = scmp.lt.s32.totalorder %s22_s10, %s22_s10 }
   0xa   :  { %p158_p3 = scmp.ne.s32.totalorder %s22_s10, %s157_s18  ;;  %p163_p5 = scmp.lt.s32.totalorder %s157_s18, %s157_s18 }
   0xc   :  { %p164_p6 = por %p163_p5, %p162_p4 }
   0xe   :  { %p165_p7 = pnand %p164_p6, %p158_p3 }
  0x10   :  { %168 = shalt.err (!%p165_p7)
}
  0x11   :  { %s208_s19 = smov 128   ;;  %s209_s20 = smov 8  }
  0x12   :  { %27 = dma.hbm_to_vmem [thread:$0]  %s263_s0, 512, %s22_s10, [#allocation4], %s208_s19, %s208_s19, %s209_s20  }
  0x13   :  { %s210_s23 = smov [#allocation6]   ;;  %s169_s27 = scalar_lea.hbm %s264_s1, 512 }
  0x14   :  { %s39_s24 = sshll.u32 %s210_s23, 4  ;;  %p170_p8 = scmp.ne.s32.totalorder %s264_s1, %s169_s27  ;;  %s40_s24 = int_to_ptr.vmem [resolvable:$true] %s39_s24 }
  0x15   :  { %p173_p9 = scmp.lt.u32.totalorder %s169_s27, %s264_s1 }
  0x17   :  { %p175_p10 = pnand %p173_p9, %p170_p8 }
  0x19   :  { %178 = shalt.err (!%p175_p10)
}
  0x1a   :  { %s179_s4 = scalar_lea.vmem %s40_s24, 512  ;;  %p184_p12 = scmp.lt.s32.totalorder %s40_s24, %s40_s24 }
  0x1b   :  { %p180_p11 = scmp.ne.s32.totalorder %s40_s24, %s179_s4  ;;  %p185_p13 = scmp.lt.s32.totalorder %s179_s4, %s179_s4 }
  0x1d   :  { %p186_p0 = por %p185_p13, %p184_p12 }
  0x1f   :  { %p187_p1 = pnand %p186_p0, %p180_p11 }
  0x21   :  { %190 = shalt.err (!%p187_p1)
}
  0x22   :  { %45 = dma.hbm_to_vmem [thread:$0]  %s264_s1, 512, %s40_s24, [#allocation7], %s208_s19, %s208_s19, %s209_s20  }
  0x23   :  { %201 = dma.done.wait [#allocation4], 512  }
  0x24   :  { %202 = vsyncadd [#allocation4], 4294966784 }
  0x25   :  { %203 = dma.done.wait [#allocation7], 512  }
  0x26   :  { %204 = vsyncadd [#allocation7], 4294966784  ;;  %v68_v0 = vld [vmem:[#allocation3] sm:$0xff]  ;;  %v69_v1 = vld [vmem:[#allocation3 + $0x8] sm:$0xff]  ;;  %s191_s8 = scalar_lea.hbm %s265_s2, 16 }
  0x27   :  { %v70_v2 = vld [vmem:[#allocation3 + $0x10] sm:$0xff]  ;;  %v71_v3 = vld [vmem:[#allocation3 + $0x18] sm:$0xff]  ;;  %v72_v4 = vld [vmem:[#allocation6] sm:$0xff]  ;;  %p192_p2 = scmp.ne.s32.totalorder %s265_s2, %s191_s8  ;;  %p195_p3 = scmp.lt.u32.totalorder %s191_s8, %s265_s2 }
  0x28   :  { %v73_v5 = vld [vmem:[#allocation6 + $0x8] sm:$0xff]  ;;  %v74_v6 = vld [vmem:[#allocation6 + $0x10] sm:$0xff]  ;;  %v75_v7 = vld [vmem:[#allocation6 + $0x18] sm:$0xff]  ;;  %v76_v8 = vsub.f32 %v68_v0, %v72_v4 }
  0x29   :  { %v77_v9 = vsub.f32 %v69_v1, %v73_v5  ;;  %v78_v10 = vsub.f32 %v70_v2, %v74_v6  ;;  %v79_v11 = vsub.f32 %v71_v3, %v75_v7  ;;  %p197_p4 = pnand %p195_p3, %p192_p2 }
  0x2a   :  { %v80_v12 = vmul.f32 %v76_v8, %v76_v8 }
  0x2b   :  { %v81_v13 = vmul.f32 %v77_v9, %v77_v9  ;;  %v82_v14 = vmul.f32 %v78_v10, %v78_v10  ;;  %v83_v15 = vmul.f32 %v79_v11, %v79_v11 }
  0x2d   :  { %v107_v16 = vadd.f32 %v81_v13, %v80_v12 }
  0x2f   :  { %v108_v17 = vadd.f32 %v107_v16, %v82_v14 }
  0x31   :  { %v109_v18 = vadd.f32 %v108_v17, %v83_v15 }
  0x33   :  { %110 = vadd.xlane.f32.xlu0 %v109_v18 }
  0xc0   :  { %v111_v19 = vpop.xlane.xlu0 %110 }
  0xc1   :  { %v112_v20 = vrot.slane %v111_v19, 4 }
  0xc3   :  { %v113_v21 = vadd.f32 %v112_v20, %v111_v19 }
  0xc5   :  { %v114_v22 = vrot.slane %v113_v21, 2 }
  0xc7   :  { %v115_v23 = vadd.f32 %v114_v22, %v113_v21 }
  0xc9   :  { %v116_v24 = vrot.slane %v115_v23, 1 }
  0xcb   :  { %v117_v25 = vadd.f32 %v116_v24, %v115_v23 }
  0xcd   :  { %140 = vpush %v117_v25 }
  0xfe   :  { %s141_s1 = spop %140 }
  0xff   :  { %120 = sst [smem:[#allocation8]] %s141_s1 }
 0x100   :  { %200 = shalt.err (!%p197_p4)
}
 0x101   :  { %s211_s13 = smov [#allocation8]  }
 0x102   :  { %128 = dma.smem_to_hbm %s211_s13, 16, %s265_s2, [#allocation5]  }
 0x103   :  { %205 = dma.done.wait [#allocation5], 16  }
 0x104   :  { %206 = vsyncadd [#allocation5], 4294967280 }
 0x105   :  { %132 = sfence }
 0x106   :  { %133 = vsyncpa [#allocation4], 1 }
 0x107   :  { %134 = vsyncpa [#allocation7], 1 }
 0x108   :  { %135 = vsyncpa [#allocation5], 1 }

</bundles_post_ra>
